<compile_context>
chip_gen: v7x
topology: tpu7x:2x2x1
jax: 0.10.0
libtpu: 0.0.40
codegen_flags: <defaults>
</compile_context>

<pallas_src>
import jax
import jax.numpy as jnp
from jax import lax
from jax.experimental import pallas as pl
from jax.experimental.pallas import tpu as pltpu
from numpy import prod

ETA = 1e-5  # pvae Constants.eta
HEAD_LANES = 128  # lane-dense padded width for the fused fc21|fc22 output


def _make_enc_wrapped_kernel(num_extra_layers, coord_dim, curvature_c):
    sqrt_c = float(curvature_c) ** 0.5

    def kernel(*refs):
        # refs = (x, w0, b0, [w_i, b_i] * num_extra_layers, w_heads, b_heads, out)
        x_ref = refs[0]
        out_ref = refs[-1]

        # --- enc: Linear(prod(data_size), hidden) + ReLU --------------------
        # x is read from HBM as f32; cast to bf16 in-vreg for the MXU.
        w0_ref, b0_ref = refs[1], refs[2]
        h = jnp.dot(x_ref[...].astype(w0_ref.dtype), w0_ref[...],
                    preferred_element_type=jnp.float32) + b0_ref[...]
        h = jnp.maximum(h, 0.0)

        # --- extra hidden layers: Linear(hidden, hidden) + ReLU -------------
        idx = 3
        for _ in range(num_extra_layers):
            w_ref, b_ref = refs[idx], refs[idx + 1]
            idx += 2
            h = jnp.dot(h.astype(w_ref.dtype), w_ref[...],
                        preferred_element_type=jnp.float32) + b_ref[...]
            h = jnp.maximum(h, 0.0)

        # --- fused heads: [fc21 | fc22 | zero-pad] in a single MXU call ------
        # Padded columns have zero weight & bias -> head[:, head_dim:] == 0.
        wh_ref, bh_ref = refs[idx], refs[idx + 1]
        head = jnp.dot(h.astype(wh_ref.dtype), wh_ref[...],
                       preferred_element_type=jnp.float32) + bh_ref[...]

        # manifold.expmap0 (Poincare ball, curvature c):
        #   expmap0(u) = tanh(sqrt(c) * ||u||) / (sqrt(c) * ||u||) * u
        # Norm taken from a static slice of the mu columns (coord_dim is a
        # Python constant), no iota/where zeroing pass needed.
        # TODO(synk): pvae manifold class not provided; this assumes the
        # canonical pvae PoincareBall(c) exponential map at the origin and
        # omits the follow-up proj() back strictly inside the ball.
        mu_part = head[:, :coord_dim]
        nrm = jnp.sqrt(jnp.sum(mu_part * mu_part, axis=-1, keepdims=True))
        arg = sqrt_c * jnp.maximum(nrm, 1e-12)
        ratio = jnp.tanh(arg) / arg  # exact division; tanh(x)/x -> 1 as x -> 0
        mu_mapped = head * ratio

        # softplus(s) + eta, single-branch stable form (one exp + one log1p).
        sigma = jnp.maximum(head, 0.0) + jnp.log1p(jnp.exp(-jnp.abs(head))) + ETA

        # Single lane-dense select: mu columns get the exp-map, the rest get
        # softplus(.)+eta (padded columns are garbage and sliced off outside).
        col = lax.broadcasted_iota(jnp.int32, head.shape, 1)
        out_ref[...] = jnp.where(col < coord_dim, mu_mapped, sigma).astype(out_ref.dtype)

    return kernel


def prepare_params(params):
    """One-time preprocessing: bf16 weight casts, fused + lane-padded head.

    params: dict with w0,b0 (first layer), w1,b1,... (extra hidden layers),
    w21,b21 (mu head), w22,b22 (scale head). Weights are (in, out) (transposed
    vs. PyTorch); biases are (1, out).
    """
    prep = {"w0": params["w0"].astype(jnp.bfloat16),
            "b0": params["b0"].astype(jnp.float32)}
    i = 1
    while f"w{i}" in params:
        prep[f"w{i}"] = params[f"w{i}"].astype(jnp.bfloat16)
        prep[f"b{i}"] = params[f"b{i}"].astype(jnp.float32)
        i += 1
    prep["num_extra"] = i - 1

    coord_dim = params["w21"].shape[1]
    scale_dim = params["w22"].shape[1]
    head_dim = coord_dim + scale_dim
    hidden = params["w21"].shape[0]
    pad_lanes = max(HEAD_LANES, ((head_dim + 127) // 128) * 128)

    w_heads = jnp.concatenate([params["w21"], params["w22"]], axis=1)
    b_heads = jnp.concatenate([params["b21"], params["b22"]], axis=1)
    w_heads = jnp.pad(w_heads, ((0, 0), (0, pad_lanes - head_dim))).astype(jnp.bfloat16)
    b_heads = jnp.pad(b_heads, ((0, 0), (0, pad_lanes - head_dim))).astype(jnp.float32)
    assert w_heads.shape == (hidden, pad_lanes)

    prep["w_heads"] = w_heads
    prep["b_heads"] = b_heads
    prep["coord_dim"] = coord_dim
    prep["scale_dim"] = scale_dim
    prep["pad_lanes"] = pad_lanes
    return prep


def _choose_batch_tile(B):
    """Batch tile: full block at tiny B; otherwise >=2 grid steps (v7x 2 TCs),
    capped at 512 rows (double-buffered f32 x tile = 4 MiB, fits every
    generation's scoped-VMEM default)."""
    if B <= 64:
        return B
    tb = min(512, pl.cdiv(B, 2))
    tb = ((tb + 7) // 8) * 8  # sublane multiple (f32)
    return min(tb, B)


def enc_wrapped(x, prep, data_size, *, curvature_c=1.0):
    """Pallas forward for EncWrapped. Returns (mu, sigma).

    The module's third return value (the manifold object) has no tensor
    semantics and is handled by the caller.
    """
    batch_dims = x.shape[: x.ndim - len(data_size)]
    x_flat = x.reshape(batch_dims + (-1,)).astype(jnp.float32)
    assert x_flat.ndim == 2, "wrapper assumes a single leading batch dim"
    B, D_in = x_flat.shape

    num_extra = prep["num_extra"]
    coord_dim = prep["coord_dim"]
    scale_dim = prep["scale_dim"]
    head_dim = coord_dim + scale_dim
    pad_lanes = prep["pad_lanes"]
    hidden = prep["w0"].shape[1]

    TB = _choose_batch_tile(B)
    grid = (pl.cdiv(B, TB),)

    def row_spec(ncols):
        return pl.BlockSpec((TB, ncols), lambda i: (i, 0))

    def const_spec(shape):
        return pl.BlockSpec(shape, lambda i: tuple(0 for _ in shape))

    operands = [x_flat, prep["w0"], prep["b0"]]
    in_specs = [row_spec(D_in), const_spec(prep["w0"].shape), const_spec(prep["b0"].shape)]
    for j in range(1, num_extra + 1):
        w, b = prep[f"w{j}"], prep[f"b{j}"]
        operands += [w, b]
        in_specs += [const_spec(w.shape), const_spec(b.shape)]
    operands += [prep["w_heads"], prep["b_heads"]]
    in_specs += [const_spec(prep["w_heads"].shape), const_spec(prep["b_heads"].shape)]

    flops = 2 * B * (D_in * hidden + num_extra * hidden * hidden + hidden * pad_lanes)
    bytes_accessed = sum(int(prod(o.shape)) * o.dtype.itemsize for o in operands)
    bytes_accessed += B * pad_lanes * 4
    transcendentals = B * (2 * pad_lanes + 2)  # exp+log1p per head col; tanh+sqrt per row

    out = pl.pallas_call(
        _make_enc_wrapped_kernel(num_extra, coord_dim, curvature_c),
        grid=grid,
        out_shape=jax.ShapeDtypeStruct((B, pad_lanes), jnp.float32),
        in_specs=in_specs,
        out_specs=row_spec(pad_lanes),
        compiler_params=pltpu.CompilerParams(dimension_semantics=("parallel",)),
        cost_estimate=pl.CostEstimate(flops=flops,
                                      transcendentals=transcendentals,
                                      bytes_accessed=bytes_accessed),
    )(*operands)

    mu = out[:, :coord_dim]
    sigma = out[:, coord_dim:head_dim]
    return mu, sigma


def init_params(key, d_in, hidden_dim, coord_dim, num_hidden_layers=2, prior_iso=False):
    """Deterministic init mimicking PyTorch Linear default U(-1/sqrt(fan_in), +)."""
    scale_dim = 1 if prior_iso else coord_dim

    def linear(k, fan_in, fan_out):
        kw, kb = jax.random.split(k)
        bound = 1.0 / jnp.sqrt(fan_in)
        w = jax.random.uniform(kw, (fan_in, fan_out), jnp.float32, -bound, bound)
        b = jax.random.uniform(kb, (1, fan_out), jnp.float32, -bound, bound)
        return w, b

    keys = jax.random.split(key, num_hidden_layers + 2)
    params = {}
    params["w0"], params["b0"] = linear(keys[0], d_in, hidden_dim)
    for j in range(1, num_hidden_layers):
        params[f"w{j}"], params[f"b{j}"] = linear(keys[j], hidden_dim, hidden_dim)
    params["w21"], params["b21"] = linear(keys[-2], hidden_dim, coord_dim)
    params["w22"], params["b22"] = linear(keys[-1], hidden_dim, scale_dim)
    return params


if __name__ == "__main__":
    B = 2
    data_size = (4, 16, 16)          # prod = 1024
    hidden_dim = 32
    num_hidden_layers = 2            # first layer + 1 extra hidden layer
    coord_dim = 8                    # manifold.coord_dim
    prior_iso = False

    key = jax.random.PRNGKey(0)
    kx, kp = jax.random.split(key)
    x = jax.random.normal(kx, (B,) + data_size, dtype=jnp.float32)
    params = init_params(kp, int(prod(data_size)), hidden_dim, coord_dim,
                         num_hidden_layers=num_hidden_layers, prior_iso=prior_iso)
    prep = prepare_params(params)    # one-time: bf16 casts + fused/padded head

    mu, sigma = enc_wrapped(x, prep, data_size, curvature_c=1.0)
    jax.block_until_ready((mu, sigma))

    assert mu.shape == (B, coord_dim)
    assert sigma.shape == (B, coord_dim if not prior_iso else 1)
    assert bool(jnp.all(sigma > 0.0))
    assert bool(jnp.all(jnp.isfinite(mu))) and bool(jnp.all(jnp.isfinite(sigma)))
    # mu must lie inside the unit Poincare ball (c=1) since tanh(.) < 1.
    assert bool(jnp.all(jnp.sum(mu * mu, axis=-1) < 1.0))
    print("KERNEL_OK")
</pallas_src>

<mosaic_0001>
module attributes {stable_mosaic.version = 11 : i64} {
  func.func @kernel(%arg0: i32, %arg1: memref<2x1024xf32, #tpu.memory_space<vmem>>, %arg2: memref<1024x32xbf16, #tpu.memory_space<vmem>>, %arg3: memref<1x32xf32, #tpu.memory_space<vmem>>, %arg4: memref<32x32xbf16, #tpu.memory_space<vmem>>, %arg5: memref<1x32xf32, #tpu.memory_space<vmem>>, %arg6: memref<32x128xbf16, #tpu.memory_space<vmem>>, %arg7: memref<1x128xf32, #tpu.memory_space<vmem>>, %arg8: memref<2x128xf32, #tpu.memory_space<vmem>>) attributes {dimension_semantics = [#tpu.dimension_semantics<parallel>], iteration_bounds = array<i64: 1>, scalar_prefetch = 0 : i64, scratch_operands = 0 : i64, tpu.core_type = #tpu.core_type<tc>, window_params = [{transform_indices = @transform_0, window_bounds = array<i64: 2, 1024>}, {pipeline_mode = #tpu.pipeline_mode<synchronous>, transform_indices = @transform_1, window_bounds = array<i64: 1024, 32>}, {pipeline_mode = #tpu.pipeline_mode<synchronous>, transform_indices = @transform_2, window_bounds = array<i64: 1, 32>}, {pipeline_mode = #tpu.pipeline_mode<synchronous>, transform_indices = @transform_3, window_bounds = array<i64: 32, 32>}, {pipeline_mode = #tpu.pipeline_mode<synchronous>, transform_indices = @transform_4, window_bounds = array<i64: 1, 32>}, {pipeline_mode = #tpu.pipeline_mode<synchronous>, transform_indices = @transform_5, window_bounds = array<i64: 32, 128>}, {pipeline_mode = #tpu.pipeline_mode<synchronous>, transform_indices = @transform_6, window_bounds = array<i64: 1, 128>}, {transform_indices = @transform_7, window_bounds = array<i64: 2, 128>}]} {
    %c0 = arith.constant 0 : index
    %c0_0 = arith.constant 0 : index
    %0 = vector.load %arg1[%c0, %c0_0] : memref<2x1024xf32, #tpu.memory_space<vmem>>, vector<2x1024xf32>
    %1 = arith.truncf %0 : vector<2x1024xf32> to vector<2x1024xbf16>
    %c0_1 = arith.constant 0 : index
    %c0_2 = arith.constant 0 : index
    %2 = vector.load %arg2[%c0_1, %c0_2] : memref<1024x32xbf16, #tpu.memory_space<vmem>>, vector<1024x32xbf16>
    %cst = arith.constant dense<0.000000e+00> : vector<2x32xf32>
    %3 = tpu.matmul %1, %2, %cst {dimension_numbers = #tpu.dot_dimension_numbers<[1], [0], [0], [1], [0, 0, 1, 1], [], []>} : vector<2x1024xbf16>, vector<1024x32xbf16>, vector<2x32xf32> -> vector<2x32xf32>
    %c0_3 = arith.constant 0 : index
    %c0_4 = arith.constant 0 : index
    %4 = vector.load %arg3[%c0_3, %c0_4] : memref<1x32xf32, #tpu.memory_space<vmem>>, vector<1x32xf32>
    %5 = vector.broadcast %4 : vector<1x32xf32> to vector<2x32xf32>
    %6 = arith.addf %3, %5 : vector<2x32xf32>
    %cst_5 = arith.constant 0.000000e+00 : f32
    %7 = vector.broadcast %cst_5 : f32 to vector<2x32xf32>
    %8 = arith.maximumf %6, %7 : vector<2x32xf32>
    %9 = arith.truncf %8 : vector<2x32xf32> to vector<2x32xbf16>
    %c0_6 = arith.constant 0 : index
    %c0_7 = arith.constant 0 : index
    %10 = vector.load %arg4[%c0_6, %c0_7] : memref<32x32xbf16, #tpu.memory_space<vmem>>, vector<32x32xbf16>
    %cst_8 = arith.constant dense<0.000000e+00> : vector<2x32xf32>
    %11 = tpu.matmul %9, %10, %cst_8 {dimension_numbers = #tpu.dot_dimension_numbers<[1], [0], [0], [1], [0, 0, 1, 1], [], []>} : vector<2x32xbf16>, vector<32x32xbf16>, vector<2x32xf32> -> vector<2x32xf32>
    %c0_9 = arith.constant 0 : index
    %c0_10 = arith.constant 0 : index
    %12 = vector.load %arg5[%c0_9, %c0_10] : memref<1x32xf32, #tpu.memory_space<vmem>>, vector<1x32xf32>
    %13 = vector.broadcast %12 : vector<1x32xf32> to vector<2x32xf32>
    %14 = arith.addf %11, %13 : vector<2x32xf32>
    %cst_11 = arith.constant 0.000000e+00 : f32
    %15 = vector.broadcast %cst_11 : f32 to vector<2x32xf32>
    %16 = arith.maximumf %14, %15 : vector<2x32xf32>
    %17 = arith.truncf %16 : vector<2x32xf32> to vector<2x32xbf16>
    %c0_12 = arith.constant 0 : index
    %c0_13 = arith.constant 0 : index
    %18 = vector.load %arg6[%c0_12, %c0_13] : memref<32x128xbf16, #tpu.memory_space<vmem>>, vector<32x128xbf16>
    %cst_14 = arith.constant dense<0.000000e+00> : vector<2x128xf32>
    %19 = tpu.matmul %17, %18, %cst_14 {dimension_numbers = #tpu.dot_dimension_numbers<[1], [0], [0], [1], [0, 0, 1, 1], [], []>} : vector<2x32xbf16>, vector<32x128xbf16>, vector<2x128xf32> -> vector<2x128xf32>
    %c0_15 = arith.constant 0 : index
    %c0_16 = arith.constant 0 : index
    %20 = vector.load %arg7[%c0_15, %c0_16] : memref<1x128xf32, #tpu.memory_space<vmem>>, vector<1x128xf32>
    %21 = vector.broadcast %20 : vector<1x128xf32> to vector<2x128xf32>
    %22 = arith.addf %19, %21 : vector<2x128xf32>
    %23 = vector.extract_strided_slice %22 {offsets = [0, 0], sizes = [2, 8], strides = [1, 1]} : vector<2x128xf32> to vector<2x8xf32>
    %24 = arith.mulf %23, %23 : vector<2x8xf32>
    %cst_17 = arith.constant dense<0.000000e+00> : vector<2xf32>
    %25 = vector.multi_reduction <add>, %24, %cst_17 [1] : vector<2x8xf32> to vector<2xf32>
    %26 = vector.shape_cast %25 : vector<2xf32> to vector<2x1xf32>
    %27 = math.sqrt %26 : vector<2x1xf32>
    %cst_18 = arith.constant 9.99999996E-13 : f32
    %28 = vector.broadcast %cst_18 : f32 to vector<2x1xf32>
    %29 = arith.maximumf %27, %28 : vector<2x1xf32>
    %cst_19 = arith.constant 1.000000e+00 : f32
    %30 = vector.broadcast %cst_19 : f32 to vector<2x1xf32>
    %31 = arith.mulf %30, %29 : vector<2x1xf32>
    %32 = math.tanh %31 : vector<2x1xf32>
    %33 = arith.divf %32, %31 : vector<2x1xf32>
    %34 = vector.broadcast %33 : vector<2x1xf32> to vector<2x128xf32>
    %35 = arith.mulf %22, %34 : vector<2x128xf32>
    %cst_20 = arith.constant 0.000000e+00 : f32
    %36 = vector.broadcast %cst_20 : f32 to vector<2x128xf32>
    %37 = arith.maximumf %22, %36 : vector<2x128xf32>
    %38 = math.absf %22 : vector<2x128xf32>
    %cst_21 = arith.constant 0.000000e+00 : f32
    %39 = vector.broadcast %cst_21 : f32 to vector<2x128xf32>
    %40 = arith.subf %39, %38 : vector<2x128xf32>
    %41 = math.exp %40 : vector<2x128xf32>
    %42 = math.log1p %41 : vector<2x128xf32>
    %43 = arith.addf %37, %42 : vector<2x128xf32>
    %cst_22 = arith.constant 9.99999974E-6 : f32
    %44 = vector.broadcast %cst_22 : f32 to vector<2x128xf32>
    %45 = arith.addf %43, %44 : vector<2x128xf32>
    %46 = tpu.iota {dimensions = array<i32: 1>} : vector<2x128xi32>
    %c8_i32 = arith.constant 8 : i32
    %47 = vector.broadcast %c8_i32 : i32 to vector<2x128xi32>
    %48 = arith.cmpi slt, %46, %47 : vector<2x128xi32>
    %49 = arith.select %48, %35, %45 : vector<2x128xi1>, vector<2x128xf32>
    %c0_23 = arith.constant 0 : index
    %c0_24 = arith.constant 0 : index
    %50 = vector.load %arg8[%c0_23, %c0_24] : memref<2x128xf32, #tpu.memory_space<vmem>>, vector<2x128xf32>
    tpu.vector_store %arg8[%c0_23, %c0_24], %49 {strides = array<i32>} : memref<2x128xf32, #tpu.memory_space<vmem>>, vector<2x128xf32>,
    return
  }
  func.func @transform_0(%arg0: i32) -> (i32, i32) {
    %c0_i32 = arith.constant 0 : i32
    %c0_i32_0 = arith.constant 0 : i32
    return %arg0, %c0_i32 : i32, i32
  }
  func.func @transform_1(%arg0: i32) -> (i32, i32) {
    %c0_i32 = arith.constant 0 : i32
    %c0_i32_0 = arith.constant 0 : i32
    %c0_i32_1 = arith.constant 0 : i32
    return %c0_i32, %c0_i32_0 : i32, i32
  }
  func.func @transform_2(%arg0: i32) -> (i32, i32) {
    %c0_i32 = arith.constant 0 : i32
    %c0_i32_0 = arith.constant 0 : i32
    %c0_i32_1 = arith.constant 0 : i32
    return %c0_i32, %c0_i32_0 : i32, i32
  }
  func.func @transform_3(%arg0: i32) -> (i32, i32) {
    %c0_i32 = arith.constant 0 : i32
    %c0_i32_0 = arith.constant 0 : i32
    %c0_i32_1 = arith.constant 0 : i32
    return %c0_i32, %c0_i32_0 : i32, i32
  }
  func.func @transform_4(%arg0: i32) -> (i32, i32) {
    %c0_i32 = arith.constant 0 : i32
    %c0_i32_0 = arith.constant 0 : i32
    %c0_i32_1 = arith.constant 0 : i32
    return %c0_i32, %c0_i32_0 : i32, i32
  }
  func.func @transform_5(%arg0: i32) -> (i32, i32) {
    %c0_i32 = arith.constant 0 : i32
    %c0_i32_0 = arith.constant 0 : i32
    %c0_i32_1 = arith.constant 0 : i32
    return %c0_i32, %c0_i32_0 : i32, i32
  }
  func.func @transform_6(%arg0: i32) -> (i32, i32) {
    %c0_i32 = arith.constant 0 : i32
    %c0_i32_0 = arith.constant 0 : i32
    %c0_i32_1 = arith.constant 0 : i32
    return %c0_i32, %c0_i32_0 : i32, i32
  }
  func.func @transform_7(%arg0: i32) -> (i32, i32) {
    %c0_i32 = arith.constant 0 : i32
    %c0_i32_0 = arith.constant 0 : i32
    return %arg0, %c0_i32 : i32, i32
  }
}

</mosaic_0001>

<bundles_post_ra>
// kernel: tpu_custom_call.1
= control target key start
LH: loop header
LB: loop body
LE: loop exit
PB: predicated region body
PF: predicated region fallthrough
CT: control target
= control target key end

     0   :  { %v36_v28 = vlaneseq  ;;  %v1241_v36 = vmov 1983009808   ;;  %s1524_s0 = inlined_call_operand.vmem [shape: f32[2,1024], index: 0, kind: input, shape index: {}]   ;;  %s1525_s1 = inlined_call_operand.vmem [shape: bf16[1024,32], index: 1, kind: input, shape index: {}]   ;;  %s1526_s2 = inlined_call_operand.vmem [shape: f32[1,32], index: 2, kind: input, shape index: {}]   ;;  %s1527_s3 = inlined_call_operand.vmem [shape: bf16[32,32], index: 3, kind: input, shape index: {}]   ;;  %s1528_s4 = inlined_call_operand.vmem [shape: f32[1,32], index: 4, kind: input, shape index: {}]   ;;  %s1529_s5 = inlined_call_operand.vmem [shape: bf16[32,128], index: 5, kind: input, shape index: {}]   ;;  %s1530_s6 = inlined_call_operand.vmem [shape: f32[1,128], index: 6, kind: input, shape index: {}]   ;;  %s1531_s7 = inlined_call_operand.hbm [shape: f32[2,128], index: 7, kind: output, shape index: {}]  }
   0x1   :  { %v1137_v0 = vld [vmem:[%s1525_s1 + $0x40] sm:$0xff]   ;;  %v1141_v4 = vld [vmem:[%s1525_s1 + $0x48] sm:$0xff]   ;;  %v1145_v8 = vld [vmem:[%s1525_s1 + $0x50] sm:$0xff]   ;;  %v34_v37 = vunpack.c.l.s4 %v1241_v36 }
   0x2   :  { %v1138_v1 = vld [vmem:[%s1525_s1 + $0xc0] sm:$0xff]   ;;  %1023 = vmatprep.subr.bf16.mxu0 %v1137_v0  ;;  %v1142_v5 = vld [vmem:[%s1525_s1 + $0xc8] sm:$0xff]   ;;  %v1146_v9 = vld [vmem:[%s1525_s1 + $0xd0] sm:$0xff]   ;;  %v37_v33 = vshrl.u32 %v36_v28, 7 }
   0x3   :  { %v1139_v2 = vld [vmem:[%s1525_s1] sm:$0xff]   ;;  %1045 = vmatprep.subr.bf16.mxu1 %v1138_v1  ;;  %v1143_v6 = vld [vmem:[%s1525_s1 + $0x8] sm:$0xff]   ;;  %v1147_v10 = vld [vmem:[%s1525_s1 + $0x10] sm:$0xff]   ;;  %v35_v39 = vunpack.c.0.s8 %v34_v37 }
   0x4   :  { %v1140_v3 = vld [vmem:[%s1525_s1 + $0x80] sm:$0xff]   ;;  %1024 = vmatpush3.bf16.msra.mxu0 %v1139_v2  ;;  %v1144_v7 = vld [vmem:[%s1525_s1 + $0x88] sm:$0xff]   ;;  %v1148_v11 = vld [vmem:[%s1525_s1 + $0x90] sm:$0xff]  }
   0x5   :  { %1046 = vmatpush3.bf16.msra.mxu1 %v1140_v3  ;;  %1025 = vmatprep.subr.bf16.mxu0 %v1141_v4  ;;  %v1149_v12 = vld [vmem:[%s1525_s1 + $0x58] sm:$0xff]   ;;  %v1153_v16 = vld [vmem:[%s1525_s1 + $0x60] sm:$0xff]   ;;  %v1157_v20 = vld [vmem:[%s1525_s1 + $0x68] sm:$0xff]   ;;  %v1391_v41 = vsub.s32 %v35_v39, %v37_v33 }
   0x6   :  { %1047 = vmatprep.subr.bf16.mxu1 %v1142_v5  ;;  %v1150_v13 = vld [vmem:[%s1525_s1 + $0xd8] sm:$0xff]   ;;  %v1154_v17 = vld [vmem:[%s1525_s1 + $0xe0] sm:$0xff]   ;;  %v1158_v21 = vld [vmem:[%s1525_s1 + $0xe8] sm:$0xff]  }
   0x7   :  { %v1151_v14 = vld [vmem:[%s1525_s1 + $0x18] sm:$0xff]   ;;  %v1155_v18 = vld [vmem:[%s1525_s1 + $0x20] sm:$0xff]   ;;  %v1159_v22 = vld [vmem:[%s1525_s1 + $0x28] sm:$0xff]  }
   0x8   :  { %1026 = vmatpush3.bf16.msra.mxu0 %v1143_v6  ;;  %v1152_v15 = vld [vmem:[%s1525_s1 + $0x98] sm:$0xff]   ;;  %v1156_v19 = vld [vmem:[%s1525_s1 + $0xa0] sm:$0xff]   ;;  %v1160_v23 = vld [vmem:[%s1525_s1 + $0xa8] sm:$0xff]  }
   0x9   :  { %1048 = vmatpush3.bf16.msra.mxu1 %v1144_v7  ;;  %1027 = vmatprep.subr.bf16.mxu0 %v1145_v8  ;;  %v1161_v24 = vld [vmem:[%s1525_s1 + $0x70] sm:$0xff]   ;;  %v1165_v29 = vld [vmem:[%s1525_s1 + $0x78] sm:$0xff]   ;;  %v28_v34 = vld [vmem:[%s1524_s0] sm:$0xff] }
   0xa   :  { %1049 = vmatprep.subr.bf16.mxu1 %v1146_v9  ;;  %v1162_v25 = vld [vmem:[%s1525_s1 + $0xf0] sm:$0xff]   ;;  %v1166_v30 = vld [vmem:[%s1525_s1 + $0xf8] sm:$0xff]   ;;  %v1170_v35 = vld [vmem:[%s1525_s1 + $0x140] sm:$0xff]   ;;  %v32_v40 = vcombine.high %v28_v34, %v28_v34  ;;  %v39_v42 = vrot.slane %v28_v34, %v1391_v41 }
   0xb   :  { %v1163_v26 = vld [vmem:[%s1525_s1 + $0x30] sm:$0xff]   ;;  %v1167_v31 = vld [vmem:[%s1525_s1 + $0x38] sm:$0xff]   ;;  %v1171_v38 = vld [vmem:[%s1525_s1 + $0x1c0] sm:$0xff]  }
   0xc   :  { %1028 = vmatpush3.bf16.msra.mxu0 %v1147_v10  ;;  %v1164_v27 = vld [vmem:[%s1525_s1 + $0xb0] sm:$0xff]   ;;  %v1168_v32 = vld [vmem:[%s1525_s1 + $0xb8] sm:$0xff]   ;;  %v46_v43 = vrot.slane %v32_v40, %v1391_v41  ;;  %v47_v44 = vcombine.high %v39_v42, %v39_v42  ;;  %v1172_v46 = vld [vmem:[%s1525_s1 + $0x100] sm:$0xff]   ;;  %v74_v47 = vpack.c.bf16 %v39_v42, %v39_v42 }
   0xd   :  { %1050 = vmatpush3.bf16.msra.mxu1 %v1148_v11  ;;  %1029 = vmatprep.subr.bf16.mxu0 %v1149_v12  ;;  %v1173_v49 = vld [vmem:[%s1525_s1 + $0x180] sm:$0xff]   ;;  %v1174_v52 = vld [vmem:[%s1525_s1 + $0x148] sm:$0xff]   ;;  %v1178_v56 = vld [vmem:[%s1525_s1 + $0x150] sm:$0xff]  }
   0xe   :  { %1051 = vmatprep.subr.bf16.mxu1 %v1150_v13  ;;  %v48_v45 = vcombine.high %v46_v43, %v46_v43  ;;  %v76_v48 = vpack.c.bf16 %v46_v43, %v46_v43  ;;  %v75_v50 = vpack.c.bf16 %v47_v44, %v47_v44  ;;  %v1175_v53 = vld [vmem:[%s1525_s1 + $0x1c8] sm:$0xff]   ;;  %v1179_v57 = vld [vmem:[%s1525_s1 + $0x1d0] sm:$0xff]   ;;  %v1182_v60 = vld [vmem:[%s1525_s1 + $0x158] sm:$0xff]  }
   0xf   :  { %v1176_v54 = vld [vmem:[%s1525_s1 + $0x108] sm:$0xff]   ;;  %v1180_v58 = vld [vmem:[%s1525_s1 + $0x110] sm:$0xff]   ;;  %v1183_v61 = vld [vmem:[%s1525_s1 + $0x1d8] sm:$0xff]  }
  0x10   :  { %1030 = vmatpush3.bf16.msra.mxu0 %v1151_v14  ;;  %v77_v51 = vpack.c.bf16 %v48_v45, %v48_v45  ;;  %633 = vmatprep.mubr.bf16.mxu0 %v75_v50  ;;  %v1177_v55 = vld [vmem:[%s1525_s1 + $0x188] sm:$0xff]   ;;  %v1181_v59 = vld [vmem:[%s1525_s1 + $0x190] sm:$0xff]   ;;  %v1184_v62 = vld [vmem:[%s1525_s1 + $0x118] sm:$0xff]  }
  0x11   :  { %1052 = vmatpush3.bf16.msra.mxu1 %v1152_v15  ;;  %1031 = vmatprep.subr.bf16.mxu0 %v1153_v16  ;;  %v1185_v63 = vld [vmem:[%s1525_s1 + $0x198] sm:$0xff]   ;;  %v1186_v0 = vld [vmem:[%s1525_s1 + $0x160] sm:$0xff]   ;;  %v1190_v4 = vld [vmem:[%s1525_s1 + $0x168] sm:$0xff]  }
  0x12   :  { %1053 = vmatprep.subr.bf16.mxu1 %v1154_v17  ;;  %673 = vmatprep.mubr.bf16.mxu1 %v77_v51  ;;  %v1187_v1 = vld [vmem:[%s1525_s1 + $0x1e0] sm:$0xff]   ;;  %v1191_v5 = vld [vmem:[%s1525_s1 + $0x1e8] sm:$0xff]   ;;  %v1194_v8 = vld [vmem:[%s1525_s1 + $0x170] sm:$0xff]  }
  0x13   :  { %v1188_v2 = vld [vmem:[%s1525_s1 + $0x120] sm:$0xff]   ;;  %v1192_v6 = vld [vmem:[%s1525_s1 + $0x128] sm:$0xff]   ;;  %v1195_v9 = vld [vmem:[%s1525_s1 + $0x1f0] sm:$0xff]  }
  0x14   :  { %1032 = vmatpush3.bf16.msra.mxu0 %v1155_v18  ;;  %v1189_v3 = vld [vmem:[%s1525_s1 + $0x1a0] sm:$0xff]   ;;  %v1193_v7 = vld [vmem:[%s1525_s1 + $0x1a8] sm:$0xff]   ;;  %v1196_v11 = vld [vmem:[%s1525_s1 + $0x130] sm:$0xff]  }
  0x15   :  { %1054 = vmatpush3.bf16.msra.mxu1 %v1156_v19  ;;  %1033 = vmatprep.subr.bf16.mxu0 %v1157_v20  ;;  %v29_v10 = vld [vmem:[%s1524_s0 + $0x8] sm:$0xff]  ;;  %v1197_v14 = vld [vmem:[%s1525_s1 + $0x1b0] sm:$0xff]  }
  0x16   :  { %1055 = vmatprep.subr.bf16.mxu1 %v1158_v21  ;;  %v56_v12 = vrot.slane %v29_v10, %v1391_v41  ;;  %v49_v13 = vcombine.high %v29_v10, %v29_v10 }
  0x18   :  { %1034 = vmatpush3.bf16.msra.mxu0 %v1159_v22  ;;  %v64_v15 = vcombine.high %v56_v12, %v56_v12  ;;  %v63_v16 = vrot.slane %v49_v13, %v1391_v41 }
  0x19   :  { %1056 = vmatpush3.bf16.msra.mxu1 %v1160_v23  ;;  %1035 = vmatprep.subr.bf16.mxu0 %v1161_v24 }
  0x1a   :  { %1057 = vmatprep.subr.bf16.mxu1 %v1162_v25 }
  0x1c   :  { %1036 = vmatpush3.bf16.msra.mxu0 %v1163_v26 }
  0x1d   :  { %1058 = vmatpush3.bf16.msra.mxu1 %v1164_v27  ;;  %1037 = vmatprep.subr.bf16.mxu0 %v1165_v29 }
  0x1e   :  { %1059 = vmatprep.subr.bf16.mxu1 %v1166_v30 }
  0x20   :  { %1038 = vmatpush3.bf16.msra.mxu0 %v1167_v31 }
  0x21   :  { %1060 = vmatpush3.bf16.msra.mxu1 %v1168_v32  ;;  %1067 = vmatprep.subr.bf16.mxu0 %v1170_v35 }
  0x22   :  { %1089 = vmatprep.subr.bf16.mxu1 %v1171_v38 }
  0x23   :  { %634 = vmatmul.mubr.bf16.vlgmr.msra.gmra.mrb[0].mxu0 %v74_v47 }
  0x24   :  { %674 = vmatmul.mubr.bf16.vlgmr.msra.gmra.mrb[0].mxu1 %v76_v48  ;;  %1068 = vmatpush3.bf16.msra.mxu0 %v1172_v46 }
  0x25   :  { %1090 = vmatpush3.bf16.msra.mxu1 %v1173_v49  ;;  %1069 = vmatprep.subr.bf16.mxu0 %v1174_v52 }
  0x26   :  { %1091 = vmatprep.subr.bf16.mxu1 %v1175_v53 }
  0x28   :  { %1070 = vmatpush3.bf16.msra.mxu0 %v1176_v54 }
  0x29   :  { %1092 = vmatpush3.bf16.msra.mxu1 %v1177_v55  ;;  %1071 = vmatprep.subr.bf16.mxu0 %v1178_v56 }
  0x2a   :  { %1093 = vmatprep.subr.bf16.mxu1 %v1179_v57 }
  0x2c   :  { %1072 = vmatpush3.bf16.msra.mxu0 %v1180_v58 }
  0x2d   :  { %1094 = vmatpush3.bf16.msra.mxu1 %v1181_v59  ;;  %1073 = vmatprep.subr.bf16.mxu0 %v1182_v60 }
  0x2e   :  { %1095 = vmatprep.subr.bf16.mxu1 %v1183_v61 }
  0x30   :  { %1074 = vmatpush3.bf16.msra.mxu0 %v1184_v62 }
  0x31   :  { %1096 = vmatpush3.bf16.msra.mxu1 %v1185_v63  ;;  %1075 = vmatprep.subr.bf16.mxu0 %v1186_v0 }
  0x32   :  { %1097 = vmatprep.subr.bf16.mxu1 %v1187_v1 }
  0x34   :  { %1076 = vmatpush3.bf16.msra.mxu0 %v1188_v2 }
  0x35   :  { %1098 = vmatpush3.bf16.msra.mxu1 %v1189_v3  ;;  %1077 = vmatprep.subr.bf16.mxu0 %v1190_v4 }
  0x36   :  { %1099 = vmatprep.subr.bf16.mxu1 %v1191_v5 }
  0x38   :  { %1078 = vmatpush3.bf16.msra.mxu0 %v1192_v6 }
  0x39   :  { %1100 = vmatpush3.bf16.msra.mxu1 %v1193_v7 }
  0x3a   :  { %12 = vsyncpa [#allocation3], 0  ;;  %1079 = vmatprep.subr.bf16.mxu0 %v1194_v8  ;;  %1101 = vmatprep.subr.bf16.mxu1 %v1195_v9  ;;  %v1198_v17 = vld [vmem:[%s1525_s1 + $0x178] sm:$0xff]   ;;  %v79_v19 = vpack.c.bf16 %v64_v15, %v64_v15  ;;  %v65_v20 = vcombine.high %v63_v16, %v63_v16  ;;  %v78_v24 = vpack.c.bf16 %v56_v12, %v56_v12  ;;  %v1203_v26 = vld [vmem:[%s1527_s3] sm:$0xff]   ;;  %v1242_v27 = vmov 0.0  }
  0x3b   :  { %v1199_v18 = vld [vmem:[%s1525_s1 + $0x1f8] sm:$0xff]   ;;  %v80_v25 = vpack.c.bf16 %v63_v16, %v63_v16  ;;  %v1204_v29 = vld [vmem:[%s1527_s3 + $0x8] sm:$0xff]   ;;  %vm1243_vm0 = vmmov 0   ;;  %v1205_v30 = vld [vmem:[%s1529_s5] sm:$0xff]   ;;  %vm786_vm1 = vcmask 261120   ;;  %vm899_vm2 = vcmask 58368  }
  0x3c   :  { %1080 = vmatpush3.bf16.msra.mxu0 %v1196_v11  ;;  %v1200_v21 = vld [vmem:[%s1525_s1 + $0x138] sm:$0xff]   ;;  %v81_v23 = vpack.c.bf16 %v65_v20, %v65_v20  ;;  %713 = vmatprep.mubr.bf16.mxu0 %v79_v19  ;;  %v950_v33 = vld [vmem:[%s1526_s2] ss:$0 sm:$0xff]  ;;  %v1206_v58 = vld [vmem:[%s1529_s5 + $0x8] sm:$0xff]  }
  0x3d   :  { %1102 = vmatpush3.bf16.msra.mxu1 %v1197_v14  ;;  %v1201_v22 = vld [vmem:[%s1525_s1 + $0x1b8] sm:$0xff]   ;;  %1081 = vmatprep.subr.bf16.mxu0 %v1198_v17  ;;  %v1015_v59 = vld [vmem:[%s1528_s4] ss:$0 sm:$0xff]  ;;  %s1244_s4 = smov [#allocation2]  }
  0x3e   :  { %1103 = vmatprep.subr.bf16.mxu1 %v1199_v18  ;;  %753 = vmatprep.mubr.bf16.mxu1 %v81_v23  ;;  %v1019_v3 = vld [vmem:[%s1530_s6] ss:$0 sm:$0xff]  ;;  %s942_s5 = sshll.u32 %s1244_s4, 4  ;;  %s943_s5 = int_to_ptr.vmem [resolvable:$true] %s942_s5 }
  0x3f   :  { %s1217_s6 = scalar_lea.vmem %s943_s5, 32  ;;  %p1222_p1 = scmp.lt.s32.totalorder %s943_s5, %s943_s5 }
  0x40   :  { %1082 = vmatpush3.bf16.msra.mxu0 %v1200_v21  ;;  %p1218_p0 = scmp.ne.s32.totalorder %s943_s5, %s1217_s6  ;;  %p1223_p2 = scmp.lt.s32.totalorder %s1217_s6, %s1217_s6 }
  0x41   :  { %1104 = vmatpush3.bf16.msra.mxu1 %v1201_v22  ;;  %1117 = vmatprep.subr.bf16.mxu0 %v1242_v27 }
  0x42   :  { %1125 = vmatprep.subr.bf16.mxu1 %v1242_v27  ;;  %p1224_p3 = por %p1223_p2, %p1222_p1 }
  0x43   :  { %714 = vmatmul.mubr.bf16.vlgmr.msra.gmra.mrb[4].mxu0 %v78_v24 }
  0x44   :  { %754 = vmatmul.mubr.bf16.vlgmr.msra.gmra.mrb[4].mxu1 %v80_v25  ;;  %1118 = vmatpush3.bf16.msra.mxu0 %v1203_v26  ;;  %p1225_p4 = pnand %p1224_p3, %p1218_p0 }
  0x45   :  { %1119 = vmatprep.subr.bf16.mxu0 %v1242_v27  ;;  %1121 = vmatprep.mubr.msk.bf16.mxu0 %vm1243_vm0, %v1242_v27 }
  0x46   :  { %1129 = vmatprep.mubr.msk.bf16.mxu1 %vm1243_vm0, %v1242_v27  ;;  %1126 = vmatpush3.bf16.msra.mxu1 %v1205_v30 }
  0x47   :  { %1127 = vmatprep.subr.bf16.mxu1 %v1242_v27 }
  0x48   :  { %1120 = vmatpush3.bf16.msra.mxu0 %v1204_v29 }
  0x4a   :  { %1128 = vmatpush3.bf16.msra.mxu1 %v1206_v58 }
  0xf6   :  { %v1039_v31 = vpop.f32.mrb[0].mxu0 }
  0xf7   :  { %v1061_v32 = vpop.f32.mrb[0].mxu1  ;;  %v1040_v34 = vpop.f32.mrb[1].mxu0 }
  0xf8   :  { %v1062_v35 = vpop.f32.mrb[1].mxu1  ;;  %v1041_v36 = vadd.f32 %v1040_v34, %v1039_v31  ;;  %v1042_v38 = vpop.f32.mrb[2].mxu0 }
  0xf9   :  { %v1063_v37 = vadd.f32 %v1062_v35, %v1061_v32  ;;  %v1064_v39 = vpop.f32.mrb[2].mxu1  ;;  %v1043_v40 = vpop.f32.mrb[3].mxu0  ;;  %v932_v32 = vand.u32 127, %v36_v28 }
  0xfa   :  { %v1065_v41 = vpop.f32.mrb[3].mxu1  ;;  %v636_v42 = vadd.f32 %v1041_v36, %v950_v33 }
  0xfb   :  { %vm933_vm6 = vcmp.lt.s32.totalorder %v932_v32, 8 }
  0xfc   :  { %v676_v43 = vadd.f32 %v1063_v37, %v636_v42 }
 0x116   :  { %v1083_v44 = vpop.f32.mrb[4].mxu0 }
 0x117   :  { %v1105_v45 = vpop.f32.mrb[4].mxu1  ;;  %v1084_v46 = vpop.f32.mrb[5].mxu0 }
 0x118   :  { %v1106_v47 = vpop.f32.mrb[5].mxu1  ;;  %v1085_v48 = vadd.f32 %v1084_v46, %v1083_v44  ;;  %v1086_v50 = vpop.f32.mrb[6].mxu0 }
 0x119   :  { %v1107_v49 = vadd.f32 %v1106_v47, %v1105_v45  ;;  %v1108_v51 = vpop.f32.mrb[6].mxu1  ;;  %v1087_v52 = vpop.f32.mrb[7].mxu0 }
 0x11a   :  { %v1109_v53 = vpop.f32.mrb[7].mxu1  ;;  %v716_v54 = vadd.f32 %v1085_v48, %v676_v43 }
 0x11c   :  { %v756_v55 = vadd.f32 %v1107_v49, %v716_v54 }
 0x11e   :  { %v761_v56 = vmax.f32 %v756_v55, 0.0 }
 0x120   :  { %v762_v57 = vpack.c.bf16 %v761_v56, %v761_v56 }
 0x122   :  { %1122 = vmatmul.mubr.msk.bf16.vlgmr.msra.gmra.mrb[8].mxu0 %vm786_vm1, %v762_v57 }
 0x1f5   :  { %v824_v60 = vpop.f32.mrb[8].mxu0 }
 0x1f6   :  { %v825_v61 = vadd.f32 %v1015_v59, %v824_v60  ;;  %v1123_v62 = vpop.f32.mrb[9].mxu0 }
 0x1f7   :  { %v827_v63 = vpop.f32.mrb[10].mxu0 }
 0x1f8   :  { %v830_v0 = vmax.f32 %v825_v61, 0.0  ;;  %v1124_v1 = vpop.f32.mrb[11].mxu0 }
 0x1fa   :  { %v831_v2 = vpack.c.bf16 %v830_v0, %v830_v0 }
 0x1fc   :  { %1130 = vmatmul.mubr.msk.bf16.vlgmr.msra.gmra.mrb[8].mxu1 %vm786_vm1, %v831_v2 }
 0x2cf   :  { %v892_v4 = vpop.f32.mrb[8].mxu1 }
 0x2d0   :  { %v893_v5 = vadd.f32 %v1019_v3, %v892_v4  ;;  %v1131_v6 = vpop.f32.mrb[9].mxu1 }
 0x2d1   :  { %v895_v7 = vpop.f32.mrb[10].mxu1 }
 0x2d2   :  { %v1132_v8 = vpop.f32.mrb[11].mxu1  ;;  %v898_v9 = vmul.f32 %v893_v5, %v893_v5  ;;  %v916_v11 = vand.u32 2147483647, %v893_v5  ;;  %v915_v31 = vmax.f32 %v893_v5, 0.0 }
 0x2d4   :  { %v900_v10 = vsel %vm899_vm2, %v898_v9, 0.0  ;;  %v917_v12 = vsub.f32 0.0, %v916_v11 }
 0x2d5   :  { %901 = vadd.xlane.f32.xlu0 %v900_v10 }
 0x2d6   :  { %v918_v13 = vmul.f32 1.442695, %v917_v12 }
 0x2d8   :  { %1207 = vpow2.f32 %v918_v13 }
 0x2e2   :  { %v1208_v15 = vpop.eup %1207 }
 0x2e3   :  { %v920_v16 = vadd.f32 1.0, %v1208_v15  ;;  %v923_v22 = vmul.f32 -0.5, %v1208_v15  ;;  %v926_v26 = vand.u32 2147483647, %v1208_v15 }
 0x2e5   :  { %v924_v25 = vadd.f32 1.0, %v923_v22  ;;  %vm927_vm5 = vcmp.lt.f32.partialorder %v926_v26, 0.0004427343 }
 0x2e7   :  { %v925_v29 = vmul.f32 %v1208_v15, %v924_v25 }
 0x362   :  { %v902_v14 = vpop.xlane.xlu0 %901 }
 0x363   :  { %1209 = vrsqrt.f32 %v902_v14  ;;  %vm905_vm3 = vcmp.eq.f32.partialorder %v902_v14, inf  ;;  %v908_v19 = vand.u32 2147483648, %v902_v14  ;;  %vm907_vm4 = vcmp.eq.f32.partialorder %v902_v14, 0.0 }
 0x364   :  { %1211 = vlog2.f32 %v920_v16 }
 0x36d   :  { %v1210_v17 = vpop.eup %1209 }
 0x36e   :  { %v904_v18 = vmul.f32 %v1210_v17, %v902_v14  ;;  %v1212_v24 = vpop.eup %1211 }
 0x36f   :  { %v922_v27 = vmul.f32 0.6931472, %v1212_v24 }
 0x370   :  { %v906_v20 = vsel %vm905_vm3, %v902_v14, %v904_v18 }
 0x371   :  { %v909_v21 = vsel %vm907_vm4, %v908_v19, %v906_v20  ;;  %v928_v30 = vsel %vm927_vm5, %v925_v29, %v922_v27 }
 0x372   :  { %v910_v23 = vmax.f32 %v909_v21, 1e-12  ;;  %v929_v34 = vadd.f32 %v928_v30, %v915_v31 }
 0x374   :  { %1213 = vtanh.f32 %v910_v23  ;;  %v930_v38 = vadd.f32 1e-05, %v929_v34 }
 0x375   :  { %1215 = vrcp.f32 %v910_v23 }
 0x37e   :  { %v1214_v33 = vpop.eup %1213 }
 0x37f   :  { %v1216_v35 = vpop.eup %1215 }
 0x380   :  { %v913_v36 = vmul.f32 %v1216_v35, %v1214_v33 }
 0x382   :  { %v914_v37 = vmul.f32 %v913_v36, %v893_v5 }
 0x384   :  { %v934_v39 = vsel %vm933_vm6, %v914_v37, %v930_v38 }
 0x385   :  { %935 = vst [vmem:[#allocation2] sm:$0x3] %v934_v39 }
 0x386   :  { %1228 = shalt.err (!%p1225_p4)
}
 0x387   :  { %s1229_s30 = scalar_lea.hbm %s1531_s7, 32 }
 0x388   :  { %p1230_p5 = scmp.ne.s32.totalorder %s1531_s7, %s1229_s30  ;;  %p1233_p6 = scmp.lt.u32.totalorder %s1229_s30, %s1531_s7 }
 0x38a   :  { %p1235_p7 = pnand %p1233_p6, %p1230_p5 }
 0x38c   :  { %1238 = shalt.err (!%p1235_p7)
}
 0x38d   :  { %945 = dma.vmem_to_hbm [thread:$0]  %s943_s5, 32, %s1531_s7, [#allocation3]  }
 0x38e   :  { %1239 = dma.done.wait [#allocation3], 32  }
 0x38f   :  { %1240 = vsyncadd [#allocation3], 4294967264 }
 0x390   :  { %949 = vsyncpa [#allocation3], 1 }

</bundles_post_ra>
